<compile_context>
chip_gen: v6e
topology: v6e:2x2x1
jax: 0.10.0
libtpu: 0.0.40
codegen_flags: <defaults>
</compile_context>

<pallas_src>
import numpy as np
import jax
import jax.numpy as jnp
from jax import lax
from jax.experimental import pallas as pl
from jax.experimental.pallas import tpu as pltpu

SCALE_ACTIVATION = 4.9   # config.SCALE_ACTIVATION (standard NEAT value)
NPAD = 128               # unit axis padded to one full lane dimension
BB = 8                   # batch rows per grid step (one f32 sublane tile)


def _round_up(x, m):
    return (x + m - 1) // m * m


def compute_levels(conns, eval_order):
    """Group evaluated units by topological level (inputs/bias = level 0)."""
    level = {}
    for u in eval_order:
        level[u] = 1 + max((level.get(s, 0) for s in conns[u]), default=0)
    groups = {}
    for u in eval_order:
        groups.setdefault(level[u], []).append(u)
    return [groups[l] for l in sorted(groups)]


def make_feed_forward_kernel(level_groups, input_ids, n_units):
    """Build a kernel with the (static) DAG structure baked in.

    level_groups : list of lists of (w_row, dest_lane) tuples; each inner list
                   is one topological level.
    """
    input_ids = tuple(int(i) for i in input_ids)

    def kernel(w_ref, x_ref, out_ref):
        # w_ref  : VMEM f32[ROWS_PAD, NPAD] incoming weights, one row per
        #          evaluated unit in level-major order (zero rows = padding)
        # x_ref  : VMEM f32[BB, NPAD]       raw inputs scattered at input lanes
        # out_ref: VMEM f32[BB, NPAD]       final state vectors
        lane = lax.broadcasted_iota(jnp.int32, (1, NPAD), 1)

        # Initial state built in-kernel (folds the wrapper concatenate in):
        # inputs at their lanes, 1.0 at every other real unit lane ("extras"),
        # 0.0 in the lane padding.  All masks are trace-time constants.
        is_input = lane == input_ids[0]
        for iid in input_ids[1:]:
            is_input = jnp.logical_or(is_input, lane == iid)
        ones_extras = jnp.where(lane < n_units, 1.0, 0.0).astype(jnp.float32)
        v = jnp.where(is_input, x_ref[...], ones_extras)            # (BB, NPAD)

        w_all = w_ref[...]                                          # (ROWS_PAD, NPAD)

        # Fully static unroll over topological levels.
        for group in level_groups:
            # 1) all reads of this level use the same pre-level state snapshot
            #    (independent lane-reduces; the scheduler can overlap them).
            vals = []
            for (row, _dst) in group:
                w_row = w_all[row:row + 1, :]                       # (1, NPAD), static slice
                s = SCALE_ACTIVATION * jnp.sum(v * w_row, axis=1,
                                               keepdims=True)       # (BB, 1)
                # sigmoid(s) = 1 / (1 + exp(-s)):
                #   exp on EUP, approx reciprocal on EUP (own VLIW slot),
                #   one Newton step (2 VPU ops in slack VALU slots) restores
                #   ~f32 accuracy so the f64-reference check stays tight.
                den = 1.0 + jnp.exp(-s)
                r = pl.reciprocal(den, approx=True)
                r = r * (2.0 - den * r)
                vals.append(r)
            # 2) apply all writes of the level: one constant-mask select per
            #    unit, state stays in vregs (no per-unit VMEM store).
            for (_row, dst), val in zip(group, vals):
                v = jnp.where(lane == dst, val, v)

        out_ref[...] = v

    return kernel


def feed_forward_net_pallas(x, W, conns, eval_order, input_ids, output_ids,
                            n_units):
    """x: (B, n_in) f32 -> (B, n_out); one independent NEAT forward per row."""
    B = x.shape[0]
    B_pad = _round_up(max(B, 1), BB)

    # ---- static (host-side, trace-time) DAG preprocessing ------------------
    level_groups_units = compute_levels(conns, eval_order)
    order_leveled = [u for grp in level_groups_units for u in grp]
    n_eval = len(order_leveled)
    rows_pad = _round_up(max(n_eval, 8), 8)

    W = np.asarray(W, np.float32)
    W_rows = np.zeros((rows_pad, NPAD), np.float32)
    for r, u in enumerate(order_leveled):
        W_rows[r, :W.shape[1]] = W[u]
    row_of = {u: r for r, u in enumerate(order_leveled)}
    level_groups = [[(row_of[u], int(u)) for u in grp]
                    for grp in level_groups_units]

    # Scatter raw inputs to their unit lanes (general: works even if the input
    # units are not a contiguous prefix of the unit list).
    x_pad = jnp.zeros((B_pad, NPAD), jnp.float32)
    x_pad = x_pad.at[:B, jnp.asarray(input_ids, jnp.int32)].set(
        x.astype(jnp.float32))

    kernel = make_feed_forward_kernel(level_groups, input_ids, n_units)

    out_state = pl.pallas_call(
        kernel,
        out_shape=jax.ShapeDtypeStruct((B_pad, NPAD), jnp.float32),
        grid=(B_pad // BB,),
        in_specs=[
            pl.BlockSpec((rows_pad, NPAD), lambda b: (0, 0)),   # W: resident
            pl.BlockSpec((BB, NPAD), lambda b: (b, 0)),         # per-batch block
        ],
        out_specs=pl.BlockSpec((BB, NPAD), lambda b: (b, 0)),
        compiler_params=pltpu.CompilerParams(
            dimension_semantics=("parallel",)),   # megacore split on v7x
    )(jnp.asarray(W_rows), x_pad)

    # torch.index_select(output_tensor, 1, output_indices)
    return out_state[:B, jnp.asarray(output_ids, jnp.int32)]


def reference_numpy(x, W, eval_order, input_ids, output_ids, n_units):
    """Pure-numpy (f64) mirror of FeedForwardNet.forward, per batch row."""
    x = np.asarray(x, np.float64)
    W = np.asarray(W, np.float64)
    B = x.shape[0]
    outs = np.zeros((B, len(output_ids)), np.float64)
    for b in range(B):
        v = np.ones((n_units,), np.float64)
        v[np.asarray(input_ids)] = x[b]
        for idx in eval_order:
            s = SCALE_ACTIVATION * float(np.dot(W[idx], v))
            v[idx] = 1.0 / (1.0 + np.exp(-s))
        outs[b] = v[np.asarray(output_ids)]
    return outs


if __name__ == "__main__":
    # --- synthetic deterministic genome ---------------------------------
    # unit ids (== positions in self.units): 0..3 inputs, 4 bias,
    # 5..7 hidden, 8..9 outputs.
    n_in, n_bias, n_hidden, n_out = 4, 1, 3, 2
    N = n_in + n_bias + n_hidden + n_out              # 10 units
    input_ids = list(range(n_in))                     # [0,1,2,3]
    output_ids = [8, 9]
    # incoming connections per (hidden/output) unit: dest -> [sources]
    conns = {
        5: [0, 1, 4],
        6: [1, 2, 3, 4, 5],
        7: [0, 3, 4, 6],
        8: [4, 5, 6, 7],
        9: [0, 4, 6, 7],
    }
    # reversed(stacked_units) == topological order from inputs to outputs
    eval_order = [5, 6, 7, 8, 9]

    # deterministic weights
    key = jax.random.PRNGKey(0)
    k_x, k_w = jax.random.split(key)
    n_conn = sum(len(s) for s in conns.values())
    w_flat = np.asarray(jax.random.normal(k_w, (n_conn,), dtype=jnp.float32))

    W = np.zeros((N, N), np.float32)
    c = 0
    for dst, srcs in conns.items():
        for src in srcs:
            W[dst, src] = w_flat[c]
            c += 1

    # --- batched example input (16 independent evaluations per call) ----
    # (perf feedback: the batch-1 kernel was pure launch overhead; batching
    # evaluations per pallas_call is the biggest wall-clock lever.)
    B = 16
    x = jax.random.normal(k_x, (B, n_in), dtype=jnp.float32)

    out = feed_forward_net_pallas(x, W, conns, eval_order, input_ids,
                                  output_ids, N)
    out = jax.block_until_ready(out)

    ref = reference_numpy(np.asarray(x), W, eval_order, input_ids,
                          output_ids, N)
    assert out.shape == (B, n_out), out.shape
    # f32 kernel (with Newton-refined approx reciprocal) vs f64 reference.
    np.testing.assert_allclose(np.asarray(out), ref, rtol=5e-4, atol=5e-4)

    print("KERNEL_OK")
</pallas_src>

<mosaic_0001>
module attributes {stable_mosaic.version = 11 : i64} {
  func.func @kernel(%arg0: i32, %arg1: memref<8x128xf32, #tpu.memory_space<vmem>>, %arg2: memref<8x128xf32, #tpu.memory_space<vmem>>, %arg3: memref<8x128xf32, #tpu.memory_space<vmem>>) attributes {dimension_semantics = [#tpu.dimension_semantics<parallel>], iteration_bounds = array<i64: 2>, scalar_prefetch = 0 : i64, scratch_operands = 0 : i64, tpu.core_type = #tpu.core_type<tc>, window_params = [{pipeline_mode = #tpu.pipeline_mode<synchronous>, transform_indices = @transform_0, window_bounds = array<i64: 8, 128>}, {transform_indices = @transform_1, window_bounds = array<i64: 8, 128>}, {transform_indices = @transform_2, window_bounds = array<i64: 8, 128>}]} {
    %0 = tpu.iota {dimensions = array<i32: 1>} : vector<1x128xi32>
    %c0_i32 = arith.constant 0 : i32
    %1 = vector.broadcast %c0_i32 : i32 to vector<1x128xi32>
    %2 = arith.cmpi eq, %0, %1 : vector<1x128xi32>
    %c1_i32 = arith.constant 1 : i32
    %3 = vector.broadcast %c1_i32 : i32 to vector<1x128xi32>
    %4 = arith.cmpi eq, %0, %3 : vector<1x128xi32>
    %5 = arith.ori %2, %4 : vector<1x128xi1>
    %c2_i32 = arith.constant 2 : i32
    %6 = vector.broadcast %c2_i32 : i32 to vector<1x128xi32>
    %7 = arith.cmpi eq, %0, %6 : vector<1x128xi32>
    %8 = arith.ori %5, %7 : vector<1x128xi1>
    %c3_i32 = arith.constant 3 : i32
    %9 = vector.broadcast %c3_i32 : i32 to vector<1x128xi32>
    %10 = arith.cmpi eq, %0, %9 : vector<1x128xi32>
    %11 = arith.ori %8, %10 : vector<1x128xi1>
    %c10_i32 = arith.constant 10 : i32
    %12 = vector.broadcast %c10_i32 : i32 to vector<1x128xi32>
    %13 = arith.cmpi slt, %0, %12 : vector<1x128xi32>
    %cst = arith.constant 1.000000e+00 : f32
    %cst_0 = arith.constant 0.000000e+00 : f32
    %14 = vector.broadcast %cst : f32 to vector<1x128xf32>
    %15 = vector.broadcast %cst_0 : f32 to vector<1x128xf32>
    %16 = arith.select %13, %14, %15 : vector<1x128xi1>, vector<1x128xf32>
    %c0 = arith.constant 0 : index
    %c0_1 = arith.constant 0 : index
    %17 = vector.load %arg2[%c0, %c0_1] : memref<8x128xf32, #tpu.memory_space<vmem>>, vector<8x128xf32>
    %18 = vector.shape_cast %11 : vector<1x128xi1> to vector<1x128xi1>
    %19 = vector.broadcast %18 : vector<1x128xi1> to vector<8x128xi1>
    %20 = vector.shape_cast %16 : vector<1x128xf32> to vector<1x128xf32>
    %21 = vector.broadcast %20 : vector<1x128xf32> to vector<8x128xf32>
    %22 = arith.select %19, %17, %21 : vector<8x128xi1>, vector<8x128xf32>
    %c0_2 = arith.constant 0 : index
    %c0_3 = arith.constant 0 : index
    %23 = vector.load %arg1[%c0_2, %c0_3] : memref<8x128xf32, #tpu.memory_space<vmem>>, vector<8x128xf32>
    %24 = vector.extract_strided_slice %23 {offsets = [0, 0], sizes = [1, 128], strides = [1, 1]} : vector<8x128xf32> to vector<1x128xf32>
    %25 = vector.broadcast %24 : vector<1x128xf32> to vector<8x128xf32>
    %26 = arith.mulf %22, %25 : vector<8x128xf32>
    %cst_4 = arith.constant dense<0.000000e+00> : vector<8xf32>
    %27 = vector.multi_reduction <add>, %26, %cst_4 [1] : vector<8x128xf32> to vector<8xf32>
    %28 = vector.shape_cast %27 : vector<8xf32> to vector<8x1xf32>
    %cst_5 = arith.constant 4.900000e+00 : f32
    %29 = vector.broadcast %cst_5 : f32 to vector<8x1xf32>
    %30 = arith.mulf %29, %28 : vector<8x1xf32>
    %cst_6 = arith.constant 0.000000e+00 : f32
    %31 = vector.broadcast %cst_6 : f32 to vector<8x1xf32>
    %32 = arith.subf %31, %30 : vector<8x1xf32>
    %33 = math.exp %32 : vector<8x1xf32>
    %cst_7 = arith.constant 1.000000e+00 : f32
    %34 = vector.broadcast %cst_7 : f32 to vector<8x1xf32>
    %35 = arith.addf %34, %33 : vector<8x1xf32>
    %36 = tpu.reciprocal %35 {approx = true} : vector<8x1xf32> -> vector<8x1xf32>
    %37 = arith.mulf %35, %36 : vector<8x1xf32>
    %cst_8 = arith.constant 2.000000e+00 : f32
    %38 = vector.broadcast %cst_8 : f32 to vector<8x1xf32>
    %39 = arith.subf %38, %37 : vector<8x1xf32>
    %40 = arith.mulf %36, %39 : vector<8x1xf32>
    %c5_i32 = arith.constant 5 : i32
    %41 = vector.broadcast %c5_i32 : i32 to vector<1x128xi32>
    %42 = arith.cmpi eq, %0, %41 : vector<1x128xi32>
    %43 = vector.shape_cast %42 : vector<1x128xi1> to vector<1x128xi1>
    %44 = vector.broadcast %43 : vector<1x128xi1> to vector<8x128xi1>
    %45 = vector.shape_cast %40 : vector<8x1xf32> to vector<8x1xf32>
    %46 = vector.broadcast %45 : vector<8x1xf32> to vector<8x128xf32>
    %47 = arith.select %44, %46, %22 : vector<8x128xi1>, vector<8x128xf32>
    %48 = vector.extract_strided_slice %23 {offsets = [1, 0], sizes = [1, 128], strides = [1, 1]} : vector<8x128xf32> to vector<1x128xf32>
    %49 = vector.broadcast %48 : vector<1x128xf32> to vector<8x128xf32>
    %50 = arith.mulf %47, %49 : vector<8x128xf32>
    %cst_9 = arith.constant dense<0.000000e+00> : vector<8xf32>
    %51 = vector.multi_reduction <add>, %50, %cst_9 [1] : vector<8x128xf32> to vector<8xf32>
    %52 = vector.shape_cast %51 : vector<8xf32> to vector<8x1xf32>
    %cst_10 = arith.constant 4.900000e+00 : f32
    %53 = vector.broadcast %cst_10 : f32 to vector<8x1xf32>
    %54 = arith.mulf %53, %52 : vector<8x1xf32>
    %cst_11 = arith.constant 0.000000e+00 : f32
    %55 = vector.broadcast %cst_11 : f32 to vector<8x1xf32>
    %56 = arith.subf %55, %54 : vector<8x1xf32>
    %57 = math.exp %56 : vector<8x1xf32>
    %cst_12 = arith.constant 1.000000e+00 : f32
    %58 = vector.broadcast %cst_12 : f32 to vector<8x1xf32>
    %59 = arith.addf %58, %57 : vector<8x1xf32>
    %60 = tpu.reciprocal %59 {approx = true} : vector<8x1xf32> -> vector<8x1xf32>
    %61 = arith.mulf %59, %60 : vector<8x1xf32>
    %cst_13 = arith.constant 2.000000e+00 : f32
    %62 = vector.broadcast %cst_13 : f32 to vector<8x1xf32>
    %63 = arith.subf %62, %61 : vector<8x1xf32>
    %64 = arith.mulf %60, %63 : vector<8x1xf32>
    %c6_i32 = arith.constant 6 : i32
    %65 = vector.broadcast %c6_i32 : i32 to vector<1x128xi32>
    %66 = arith.cmpi eq, %0, %65 : vector<1x128xi32>
    %67 = vector.shape_cast %66 : vector<1x128xi1> to vector<1x128xi1>
    %68 = vector.broadcast %67 : vector<1x128xi1> to vector<8x128xi1>
    %69 = vector.shape_cast %64 : vector<8x1xf32> to vector<8x1xf32>
    %70 = vector.broadcast %69 : vector<8x1xf32> to vector<8x128xf32>
    %71 = arith.select %68, %70, %47 : vector<8x128xi1>, vector<8x128xf32>
    %72 = vector.extract_strided_slice %23 {offsets = [2, 0], sizes = [1, 128], strides = [1, 1]} : vector<8x128xf32> to vector<1x128xf32>
    %73 = vector.broadcast %72 : vector<1x128xf32> to vector<8x128xf32>
    %74 = arith.mulf %71, %73 : vector<8x128xf32>
    %cst_14 = arith.constant dense<0.000000e+00> : vector<8xf32>
    %75 = vector.multi_reduction <add>, %74, %cst_14 [1] : vector<8x128xf32> to vector<8xf32>
    %76 = vector.shape_cast %75 : vector<8xf32> to vector<8x1xf32>
    %cst_15 = arith.constant 4.900000e+00 : f32
    %77 = vector.broadcast %cst_15 : f32 to vector<8x1xf32>
    %78 = arith.mulf %77, %76 : vector<8x1xf32>
    %cst_16 = arith.constant 0.000000e+00 : f32
    %79 = vector.broadcast %cst_16 : f32 to vector<8x1xf32>
    %80 = arith.subf %79, %78 : vector<8x1xf32>
    %81 = math.exp %80 : vector<8x1xf32>
    %cst_17 = arith.constant 1.000000e+00 : f32
    %82 = vector.broadcast %cst_17 : f32 to vector<8x1xf32>
    %83 = arith.addf %82, %81 : vector<8x1xf32>
    %84 = tpu.reciprocal %83 {approx = true} : vector<8x1xf32> -> vector<8x1xf32>
    %85 = arith.mulf %83, %84 : vector<8x1xf32>
    %cst_18 = arith.constant 2.000000e+00 : f32
    %86 = vector.broadcast %cst_18 : f32 to vector<8x1xf32>
    %87 = arith.subf %86, %85 : vector<8x1xf32>
    %88 = arith.mulf %84, %87 : vector<8x1xf32>
    %c7_i32 = arith.constant 7 : i32
    %89 = vector.broadcast %c7_i32 : i32 to vector<1x128xi32>
    %90 = arith.cmpi eq, %0, %89 : vector<1x128xi32>
    %91 = vector.shape_cast %90 : vector<1x128xi1> to vector<1x128xi1>
    %92 = vector.broadcast %91 : vector<1x128xi1> to vector<8x128xi1>
    %93 = vector.shape_cast %88 : vector<8x1xf32> to vector<8x1xf32>
    %94 = vector.broadcast %93 : vector<8x1xf32> to vector<8x128xf32>
    %95 = arith.select %92, %94, %71 : vector<8x128xi1>, vector<8x128xf32>
    %96 = vector.extract_strided_slice %23 {offsets = [3, 0], sizes = [1, 128], strides = [1, 1]} : vector<8x128xf32> to vector<1x128xf32>
    %97 = vector.broadcast %96 : vector<1x128xf32> to vector<8x128xf32>
    %98 = arith.mulf %95, %97 : vector<8x128xf32>
    %cst_19 = arith.constant dense<0.000000e+00> : vector<8xf32>
    %99 = vector.multi_reduction <add>, %98, %cst_19 [1] : vector<8x128xf32> to vector<8xf32>
    %100 = vector.shape_cast %99 : vector<8xf32> to vector<8x1xf32>
    %cst_20 = arith.constant 4.900000e+00 : f32
    %101 = vector.broadcast %cst_20 : f32 to vector<8x1xf32>
    %102 = arith.mulf %101, %100 : vector<8x1xf32>
    %cst_21 = arith.constant 0.000000e+00 : f32
    %103 = vector.broadcast %cst_21 : f32 to vector<8x1xf32>
    %104 = arith.subf %103, %102 : vector<8x1xf32>
    %105 = math.exp %104 : vector<8x1xf32>
    %cst_22 = arith.constant 1.000000e+00 : f32
    %106 = vector.broadcast %cst_22 : f32 to vector<8x1xf32>
    %107 = arith.addf %106, %105 : vector<8x1xf32>
    %108 = tpu.reciprocal %107 {approx = true} : vector<8x1xf32> -> vector<8x1xf32>
    %109 = arith.mulf %107, %108 : vector<8x1xf32>
    %cst_23 = arith.constant 2.000000e+00 : f32
    %110 = vector.broadcast %cst_23 : f32 to vector<8x1xf32>
    %111 = arith.subf %110, %109 : vector<8x1xf32>
    %112 = arith.mulf %108, %111 : vector<8x1xf32>
    %113 = vector.extract_strided_slice %23 {offsets = [4, 0], sizes = [1, 128], strides = [1, 1]} : vector<8x128xf32> to vector<1x128xf32>
    %114 = vector.broadcast %113 : vector<1x128xf32> to vector<8x128xf32>
    %115 = arith.mulf %95, %114 : vector<8x128xf32>
    %cst_24 = arith.constant dense<0.000000e+00> : vector<8xf32>
    %116 = vector.multi_reduction <add>, %115, %cst_24 [1] : vector<8x128xf32> to vector<8xf32>
    %117 = vector.shape_cast %116 : vector<8xf32> to vector<8x1xf32>
    %cst_25 = arith.constant 4.900000e+00 : f32
    %118 = vector.broadcast %cst_25 : f32 to vector<8x1xf32>
    %119 = arith.mulf %118, %117 : vector<8x1xf32>
    %cst_26 = arith.constant 0.000000e+00 : f32
    %120 = vector.broadcast %cst_26 : f32 to vector<8x1xf32>
    %121 = arith.subf %120, %119 : vector<8x1xf32>
    %122 = math.exp %121 : vector<8x1xf32>
    %cst_27 = arith.constant 1.000000e+00 : f32
    %123 = vector.broadcast %cst_27 : f32 to vector<8x1xf32>
    %124 = arith.addf %123, %122 : vector<8x1xf32>
    %125 = tpu.reciprocal %124 {approx = true} : vector<8x1xf32> -> vector<8x1xf32>
    %126 = arith.mulf %124, %125 : vector<8x1xf32>
    %cst_28 = arith.constant 2.000000e+00 : f32
    %127 = vector.broadcast %cst_28 : f32 to vector<8x1xf32>
    %128 = arith.subf %127, %126 : vector<8x1xf32>
    %129 = arith.mulf %125, %128 : vector<8x1xf32>
    %c8_i32 = arith.constant 8 : i32
    %130 = vector.broadcast %c8_i32 : i32 to vector<1x128xi32>
    %131 = arith.cmpi eq, %0, %130 : vector<1x128xi32>
    %132 = vector.shape_cast %131 : vector<1x128xi1> to vector<1x128xi1>
    %133 = vector.broadcast %132 : vector<1x128xi1> to vector<8x128xi1>
    %134 = vector.shape_cast %112 : vector<8x1xf32> to vector<8x1xf32>
    %135 = vector.broadcast %134 : vector<8x1xf32> to vector<8x128xf32>
    %136 = arith.select %133, %135, %95 : vector<8x128xi1>, vector<8x128xf32>
    %c9_i32 = arith.constant 9 : i32
    %137 = vector.broadcast %c9_i32 : i32 to vector<1x128xi32>
    %138 = arith.cmpi eq, %0, %137 : vector<1x128xi32>
    %139 = vector.shape_cast %138 : vector<1x128xi1> to vector<1x128xi1>
    %140 = vector.broadcast %139 : vector<1x128xi1> to vector<8x128xi1>
    %141 = vector.shape_cast %129 : vector<8x1xf32> to vector<8x1xf32>
    %142 = vector.broadcast %141 : vector<8x1xf32> to vector<8x128xf32>
    %143 = arith.select %140, %142, %136 : vector<8x128xi1>, vector<8x128xf32>
    %c0_29 = arith.constant 0 : index
    %c0_30 = arith.constant 0 : index
    %144 = vector.load %arg3[%c0_29, %c0_30] : memref<8x128xf32, #tpu.memory_space<vmem>>, vector<8x128xf32>
    tpu.vector_store %arg3[%c0_29, %c0_30], %143 {strides = array<i32>} : memref<8x128xf32, #tpu.memory_space<vmem>>, vector<8x128xf32>,
    return
  }
  func.func @transform_0(%arg0: i32) -> (i32, i32) {
    %c0_i32 = arith.constant 0 : i32
    %c0_i32_0 = arith.constant 0 : i32
    %c0_i32_1 = arith.constant 0 : i32
    return %c0_i32, %c0_i32_0 : i32, i32
  }
  func.func @transform_1(%arg0: i32) -> (i32, i32) {
    %c0_i32 = arith.constant 0 : i32
    %c0_i32_0 = arith.constant 0 : i32
    return %arg0, %c0_i32 : i32, i32
  }
  func.func @transform_2(%arg0: i32) -> (i32, i32) {
    %c0_i32 = arith.constant 0 : i32
    %c0_i32_0 = arith.constant 0 : i32
    return %arg0, %c0_i32 : i32, i32
  }
}

</mosaic_0001>

<bundles_post_ra>
// kernel: tpu_custom_call.1
= control target key start
LH: loop header
LB: loop body
LE: loop exit
PB: predicated region body
PF: predicated region fallthrough
CT: control target
= control target key end

     0   :  { %7 = vsyncpa [#allocation3], 0  ;;  %s815_s0 = inlined_call_operand.hbm [shape: f32[8,128], index: 0, kind: input, shape index: {}]   ;;  %s816_s1 = inlined_call_operand.hbm [shape: f32[16,128], index: 1, kind: input, shape index: {}]   ;;  %s817_s2 = inlined_call_operand.hbm [shape: f32[16,128], index: 2, kind: output, shape index: {}]  }
   0x1   :  { %8 = vsyncpa [#allocation6], 0 }
   0x2   :  { %10 = vsyncpa [#allocation6 + $0x1], 0 }
   0x3   :  { %11 = vsyncpa [#allocation4], 0 }
   0x4   :  { %13 = vsyncpa [#allocation4 + $0x1], 0  ;;  %s620_s9 = smov 0   ;;  %s622_s10 = smov 0  }
   0x5   :  { %s624_s11 = smov 0   ;;  %s626_s12 = smov 0  }
   0x6 LB: > { %s641_s13 = sadd.s32 4294967295, %s599_s12   ;;  %s385_s14 = sadd.s32 4294967294, %s599_s12   ;;  %s599_s12 = sphi %s626_s12, %s840_s12   ;;  %s595_s11 = sphi %s624_s11, %s839_s11   ;;  %s591_s10 = sphi %s622_s10, %s838_s10   ;;  %s587_s9 = sphi %s620_s9, %s837_s9  }
   0x7   : > { %p60_p0 = scmp.ne.s32.totalorder %s591_s10, %s587_s9  ;;  %p818_p1 = scmp.eq.s32.totalorder %s641_s13, 0 }
   0x8   : > { %p90_p3 = scmp.eq.s32.totalorder %s385_s14, 1  ;;  %p386_p5 = scmp.ge.s32.totalorder %s599_s12, 1 }
   0x9   : > { %p650_p4 = por %p818_p1, %p60_p0  ;;  %p97_p7 = scmp.lt.s32.totalorder %s599_s12, 3 }
   0xa   : > { %p655_p6 = por %p90_p3, %p60_p0  ;;  %s601_s18 = smov [#allocation2]  }
   0xb   : > { %s822_s15 = scalar_select %p650_p4, 1, 0 }
   0xc   : > { %s823_s16 = scalar_select %p655_p6, 1, 0 }
   0xd   : > { %p660_p8 = pnand %p386_p5, %p97_p7  ;;  %s110_s19 = sshll.u32 %s601_s18, 4  ;;  %s111_s19 = int_to_ptr.vmem [resolvable:$true] %s110_s19 }
   0xe   : > { %s668_s20 = sadd.s32 1, %s599_s12   ;;  %s47_s24 = sadd.s32 1, %s595_s11 }
   0xf   : > { %s824_s17 = scalar_select %p660_p8, 1, 0 }
  0x10   : > { %p407_p10 = pneg %p660_p8  ;;  %s44_s22 = ssub.s32 %s599_s12, %s668_s20 }
  0x11   : > { %p678_p12 = scmp.eq.s32.totalorder %s44_s22, 0  ;;  %p54_p13 = scmp.ne.s32.totalorder %s595_s11, %s591_s10 }
  0x12   : > { %p672_p11 = pnand %p407_p10, %p818_p1  ;;  %s488_s25 = scalar_lea.vmem %s111_s19, 128 }
  0x13   : > { %p489_p3 = scmp.ne.s32.totalorder %s111_s19, %s488_s25  ;;  %p496_p9 = scmp.lt.s32.totalorder %s111_s19, %s111_s19 }
  0x14   : > { %p479_p0 = pneg %p672_p11  ;;  %p497_p2 = scmp.lt.s32.totalorder %s488_s25, %s488_s25 }
  0x16   : > { %p491_p5 = pnand %p489_p3, %p479_p0  ;;  %p498_p10 = por %p497_p2, %p496_p9 }
  0x18   : > { %p492_p7 = pneg %p491_p5 }
  0x1a   : > { %p499_p1 = pnand %p498_p10, %p492_p7 }
  0x1c   : > { %502 = shalt.err (!%p499_p1)
}
  0x1d   : > { %410 = dma.hbm_to_vmem [thread:$0]  (!%p672_p11), %s815_s0, 128, %s111_s19, [#allocation3]  }
  0x1e   : > { %s695_s28 = scalar_select %p678_p12, %s595_s11, %s47_s24  }
  0x1f   : > { %p55_p1 = scmp.eq.s32.totalorder %s599_s12, 0  ;;  %p827_p2 = scmp.eq.s32.totalorder %s641_s13, 1 }
  0x20   : > { %p420_p0 = scmp.lt.s32.totalorder %s599_s12, 2  ;;  %s121_s30 = sand.u32 1, %s595_s11  }
  0x21   : > { %p703_p9 = por %p827_p2, %p54_p13  ;;  %p56_p3 = por %p55_p1, %p54_p13 }
  0x22   : > { %s389_s3 = sshll.u32 %s121_s30, 3  ;;  %s390_s4 = sshll.u32 %s599_s12, 7 }
  0x23   : > { %s828_s29 = scalar_select %p703_p9, 1, 0 }
  0x24   : > { %s716_s7 = scalar_lea.hbm %s816_s1, %s390_s4  ;;  %s125_s8 = scalar_lea.vmem [#allocation5], %s389_s3 }
  0x25   : > { %s132_s14 = sshll.u32 %s125_s8, 4  ;;  %p718_p11 = pnand %p420_p0, %p56_p3  ;;  %s133_s14 = int_to_ptr.vmem [resolvable:$true] %s132_s14 }
  0x26   : > { %s122_s19 = scalar_lea.sflag [#allocation6], %s121_s30  ;;  %s503_s21 = scalar_lea.hbm %s716_s7, 128 }
  0x27   : > { %p504_p12 = scmp.ne.s32.totalorder %s716_s7, %s503_s21  ;;  %p505_p13 = pneg %p718_p11 }
  0x28   : > { %s508_s24 = scalar_lea.hbm %s816_s1, 256  ;;  %p509_p10 = scmp.lt.s32.totalorder %s716_s7, %s816_s1 }
  0x29   : > { %p506_p5 = pnand %p505_p13, %p504_p12  ;;  %p510_p1 = scmp.lt.s32.totalorder %s508_s24, %s503_s21 }
  0x2b   : > { %p507_p7 = pneg %p506_p5  ;;  %p511_p2 = por %p510_p1, %p509_p10 }
  0x2d   : > { %p512_p0 = pnand %p511_p2, %p507_p7 }
  0x2f   : > { %515 = shalt.err (!%p512_p0)
}
  0x30   : > { %s516_s27 = scalar_lea.vmem %s133_s14, 128  ;;  %s602_s30 = smov [#allocation5]  }
  0x31   : > { %p517_p3 = scmp.ne.s32.totalorder %s133_s14, %s516_s27  ;;  %s521_s3 = sshll.u32 %s602_s30, 4  ;;  %s522_s3 = int_to_ptr.vmem [resolvable:$false] %s521_s3 }
  0x32   : > { %s523_s4 = scalar_lea.vmem %s522_s3, 256  ;;  %p524_p12 = scmp.lt.s32.totalorder %s133_s14, %s522_s3 }
  0x33   : > { %p519_p6 = pnand %p517_p3, %p505_p13  ;;  %p525_p5 = scmp.lt.s32.totalorder %s523_s4, %s516_s27 }
  0x35   : > { %p520_p9 = pneg %p519_p6  ;;  %p526_p4 = por %p525_p5, %p524_p12 }
  0x37   : > { %p527_p8 = pnand %p526_p4, %p520_p9 }
  0x39   : > { %530 = shalt.err (!%p527_p8)
}
  0x3a   : > { %414 = dma.hbm_to_vmem [thread:$0]  (!%p718_p11), %s716_s7, 128, %s133_s14, %s122_s19  }
  0x3b   : > { %p830_p7 = scmp.ne.s32.totalorder %s824_s17, 0 }
  0x3c   : > { %p831_p10 = scmp.eq.s32.totalorder (!%p830_p7), %s641_s13, 0 }
  0x3d   : > { %141 = sbr.rel (%p830_p7) target bundleno = 827 (0x33b), region = 28 }
  0x42   : > { %574 = dma.done.wait (%p831_p10), [#allocation3], 128   ;;  %p832_p6 = pmov %p831_p10 }
  0x43   : > { %s743_s5 = sand.u32 1, %s591_s10   ;;  %p833_p4 = scmp.ne.s32.totalorder %s822_s15, 0 }
  0x44   : > { %576 = vsyncadd (%p832_p6), [#allocation3], 4294967168  ;;  %s393_s6 = sshll.u32 %s743_s5, 3  ;;  %s148_s8 = scalar_lea.sflag [#allocation6], %s743_s5 }
  0x45   : > { %s151_s7 = scalar_lea.vmem [#allocation5], %s393_s6 }
  0x46   : > { %578 = dma.done.wait (%p833_p4), %s148_s8, 128  }
  0x47   : > { %580 = vsyncadd (%p833_p4), %s148_s8, 4294967168  ;;  %v172_v0 = vlaneseq  ;;  %v603_v4 = vmov 0.0   ;;  %v183_v6 = vld [vmem:[%s151_s7] sm:$0xff]  ;;  %v187_v7 = vld [vmem:[#allocation2] sm:$0xff]  ;;  %s396_s15 = sshll.u32 %s641_s13, 7  ;;  %s171_s17 = scalar_lea.vmem [#allocation7], %s393_s6 }
  0x48   : > { %s303_s14 = sshll.u32 %s171_s17, 4  ;;  %s778_s21 = scalar_lea.hbm %s817_s2, %s396_s15  ;;  %s304_s14 = int_to_ptr.vmem [resolvable:$true] %s303_s14 }
  0x49   : > { %v753_v1 = vand.u32 127, %v172_v0  ;;  %v755_v2 = vshrl.u32 %v172_v0, 7  ;;  %s290_s22 = scalar_lea.sflag [#allocation4], %s743_s5  ;;  %s531_s23 = scalar_lea.vmem %s304_s14, 128 }
  0x4a   : > { %p532_p8 = scmp.ne.s32.totalorder %s304_s14, %s531_s23  ;;  %p834_p9 = scmp.ne.s32.totalorder %s828_s29, 0 }
  0x4b   : > { %vm174_vm0 = vcmp.eq.s32.totalorder %v753_v1, 0  ;;  %vm175_vm1 = vcmp.eq.s32.totalorder %v753_v1, 1  ;;  %vm177_vm2 = vcmp.eq.s32.totalorder %v753_v1, 2  ;;  %vm179_vm3 = vcmp.eq.s32.totalorder %v753_v1, 3  ;;  %s604_s13 = smov [#allocation7]  }
  0x4c   : > { %vm176_vm4 = vmor %vm174_vm0, %vm175_vm1  ;;  %vm181_vm5 = vcmp.lt.s32.totalorder %v753_v1, 10  ;;  %v190_v3 = vsub.s32 0, %v755_v2  ;;  %v210_v18 = vsub.s32 1, %v755_v2  ;;  %vm204_vm8 = vcmp.eq.s32.totalorder %v753_v1, 5  ;;  %p533_p11 = pnand %p532_p8, %p834_p9  ;;  %s535_s24 = sshll.u32 %s604_s13, 4  ;;  %s536_s24 = int_to_ptr.vmem [resolvable:$false] %s535_s24 }
  0x4d   : > { %vm178_vm6 = vmor %vm176_vm4, %vm177_vm2  ;;  %v182_v5 = vsel %vm181_vm5, 1.0, %v603_v4  ;;  %v230_v32 = vsub.s32 2, %v755_v2  ;;  %vm224_vm9 = vcmp.eq.s32.totalorder %v753_v1, 6  ;;  %v266_v46 = vsub.s32 4, %v755_v2  ;;  %s537_s25 = scalar_lea.vmem %s536_s24, 256  ;;  %p538_p1 = scmp.lt.s32.totalorder %s304_s14, %s536_s24 }
  0x4e   : > { %vm180_vm7 = vmor %vm178_vm6, %vm179_vm3  ;;  %v191_v9 = vrot.slane %v187_v7, %v190_v3  ;;  %v211_v21 = vrot.slane %v187_v7, %v210_v18  ;;  %v250_v47 = vsub.s32 3, %v755_v2  ;;  %vm244_vm10 = vcmp.eq.s32.totalorder %v753_v1, 7  ;;  %p534_p13 = pneg %p533_p11  ;;  %p539_p2 = scmp.lt.s32.totalorder %s537_s25, %s531_s23 }
  0x4f   : > { %v186_v8 = vsel %vm180_vm7, %v183_v6, %v182_v5  ;;  %v231_v35 = vrot.slane %v187_v7, %v230_v32  ;;  %v267_v50 = vrot.slane %v187_v7, %v266_v46  ;;  %vm280_vm11 = vcmp.eq.s32.totalorder %v753_v1, 8 }
  0x50   : > { %v192_v10 = vmul.f32 %v191_v9, %v186_v8  ;;  %v251_v51 = vrot.slane %v187_v7, %v250_v47  ;;  %vm284_vm12 = vcmp.eq.s32.totalorder %v753_v1, 9  ;;  %p540_p0 = por %p539_p2, %p538_p1 }
  0x52   : > { %193 = vadd.xlane.f32.xlu0 %v192_v10  ;;  %p541_p3 = pnand %p540_p0, %p534_p13 }
  0xdb   : > { %v194_v11 = vpop.xlane.xlu0 %193 }
  0xdc   : > { %v195_v12 = vmul.f32 4.9, %v194_v11 }
  0xde   : > { %v196_v13 = vsub.f32 0.0, %v195_v12 }
  0xe0   : > { %v197_v14 = vmul.f32 1.442695, %v196_v13 }
  0xe2   : > { %457 = vpow2.f32 %v197_v14 }
  0xef   : > { %v458_v15 = vpop.eup %457 }
  0xf0   : > { %v199_v16 = vadd.f32 1.0, %v458_v15 }
  0xf2   : > { %459 = vrcp.f32 %v199_v16 }
  0xff   : > { %v460_v17 = vpop.eup %459 }
 0x100   : > { %v201_v19 = vmul.f32 %v460_v17, %v199_v16 }
 0x102   : > { %v202_v20 = vsub.f32 2.0, %v201_v19 }
 0x104   : > { %v203_v22 = vmul.f32 %v460_v17, %v202_v20 }
 0x106   : > { %v207_v23 = vsel %vm204_vm8, %v203_v22, %v186_v8 }
 0x107   : > { %v212_v24 = vmul.f32 %v211_v21, %v207_v23 }
 0x109   : > { %213 = vadd.xlane.f32.xlu0 %v212_v24 }
 0x192   : > { %v214_v25 = vpop.xlane.xlu0 %213 }
 0x193   : > { %v215_v26 = vmul.f32 4.9, %v214_v25 }
 0x195   : > { %v216_v27 = vsub.f32 0.0, %v215_v26 }
 0x197   : > { %v217_v28 = vmul.f32 1.442695, %v216_v27 }
 0x199   : > { %461 = vpow2.f32 %v217_v28 }
 0x1a6   : > { %v462_v29 = vpop.eup %461 }
 0x1a7   : > { %v219_v30 = vadd.f32 1.0, %v462_v29 }
 0x1a9   : > { %463 = vrcp.f32 %v219_v30 }
 0x1b6   : > { %v464_v31 = vpop.eup %463 }
 0x1b7   : > { %v221_v33 = vmul.f32 %v464_v31, %v219_v30 }
 0x1b9   : > { %v222_v34 = vsub.f32 2.0, %v221_v33 }
 0x1bb   : > { %v223_v36 = vmul.f32 %v464_v31, %v222_v34 }
 0x1bd   : > { %v227_v37 = vsel %vm224_vm9, %v223_v36, %v207_v23 }
 0x1be   : > { %v232_v38 = vmul.f32 %v231_v35, %v227_v37 }
 0x1c0   : > { %233 = vadd.xlane.f32.xlu1 %v232_v38 }
 0x249   : > { %v234_v39 = vpop.xlane.xlu1 %233 }
 0x24a   : > { %v235_v40 = vmul.f32 4.9, %v234_v39 }
 0x24c   : > { %v236_v41 = vsub.f32 0.0, %v235_v40 }
 0x24e   : > { %v237_v42 = vmul.f32 1.442695, %v236_v41 }
 0x250   : > { %465 = vpow2.f32 %v237_v42 }
 0x25d   : > { %v466_v43 = vpop.eup %465 }
 0x25e   : > { %v239_v44 = vadd.f32 1.0, %v466_v43 }
 0x260   : > { %467 = vrcp.f32 %v239_v44 }
 0x26d   : > { %v468_v45 = vpop.eup %467 }
 0x26e   : > { %v241_v48 = vmul.f32 %v468_v45, %v239_v44 }
 0x270   : > { %v242_v49 = vsub.f32 2.0, %v241_v48 }
 0x272   : > { %v243_v52 = vmul.f32 %v468_v45, %v242_v49 }
 0x274   : > { %v247_v53 = vsel %vm244_vm10, %v243_v52, %v227_v37 }
 0x275   : > { %v268_v54 = vmul.f32 %v267_v50, %v247_v53  ;;  %v252_v55 = vmul.f32 %v251_v51, %v247_v53 }
 0x277   : > { %269 = vadd.xlane.f32.xlu0 %v268_v54  ;;  %253 = vadd.xlane.f32.xlu1 %v252_v55 }
 0x300   : > { %v270_v56 = vpop.xlane.xlu0 %269  ;;  %v254_v57 = vpop.xlane.xlu1 %253 }
 0x301   : > { %v271_v58 = vmul.f32 4.9, %v270_v56  ;;  %v255_v59 = vmul.f32 4.9, %v254_v57 }
 0x303   : > { %v272_v60 = vsub.f32 0.0, %v271_v58  ;;  %v256_v61 = vsub.f32 0.0, %v255_v59 }
 0x305   : > { %v273_v62 = vmul.f32 1.442695, %v272_v60  ;;  %v257_v63 = vmul.f32 1.442695, %v256_v61 }
 0x307   : > { %469 = vpow2.f32 %v273_v62 }
 0x308   : > { %471 = vpow2.f32 %v257_v63 }
 0x314   : > { %v470_v0 = vpop.eup %469 }
 0x315   : > { %v472_v2 = vpop.eup %471  ;;  %v275_v3 = vadd.f32 1.0, %v470_v0 }
 0x316   : > { %v259_v4 = vadd.f32 1.0, %v472_v2 }
 0x317   : > { %473 = vrcp.f32 %v275_v3 }
 0x318   : > { %475 = vrcp.f32 %v259_v4 }
 0x324   : > { %v474_v5 = vpop.eup %473 }
 0x325   : > { %v476_v6 = vpop.eup %475  ;;  %v277_v7 = vmul.f32 %v474_v5, %v275_v3 }
 0x326   : > { %v261_v8 = vmul.f32 %v476_v6, %v259_v4 }
 0x327   : > { %v278_v9 = vsub.f32 2.0, %v277_v7 }
 0x328   : > { %v262_v10 = vsub.f32 2.0, %v261_v8 }
 0x329   : > { %v279_v11 = vmul.f32 %v474_v5, %v278_v9 }
 0x32a   : > { %v263_v12 = vmul.f32 %v476_v6, %v262_v10 }
 0x32c   : > { %v283_v13 = vsel %vm280_vm11, %v263_v12, %v247_v53 }
 0x32d   : > { %v287_v14 = vsel %vm284_vm12, %v279_v11, %v283_v13 }
 0x32e   : > { %288 = vst [vmem:[%s171_s17] sm:$0xff] %v287_v14 }
 0x32f   : > { %544 = shalt.err (!%p541_p3)
}
 0x330   : > { %s545_s26 = scalar_lea.hbm %s778_s21, 128  ;;  %s549_s3 = scalar_lea.hbm %s817_s2, 256 }
 0x331   : > { %p546_p12 = scmp.ne.s32.totalorder %s778_s21, %s545_s26  ;;  %p550_p10 = scmp.lt.s32.totalorder %s778_s21, %s817_s2 }
 0x332   : > { %p551_p6 = scmp.lt.s32.totalorder %s549_s3, %s545_s26 }
 0x333   : > { %p547_p5 = pnand %p546_p12, %p834_p9 }
 0x334   : > { %p552_p4 = por %p551_p6, %p550_p10 }
 0x335   : > { %p548_p7 = pneg %p547_p5 }
 0x337   : > { %p553_p8 = pnand %p552_p4, %p548_p7 }
 0x339   : > { %556 = shalt.err (!%p553_p8)
}
 0x33a   : > { %405 = dma.vmem_to_hbm [thread:$0]  (%p834_p9), %s304_s14, 128, %s778_s21, %s290_s22  }
 0x33b PF: > { %s315_s6 = sand.u32 1, %s587_s9   ;;  %p835_p11 = scmp.ne.s32.totalorder %s823_s16, 0 }
 0x33c   : > { %p836_p13 = scmp.ge.s32.totalorder %s599_s12, 2  ;;  %s316_s8 = scalar_lea.sflag [#allocation4], %s315_s6 }
 0x33e   : > { %p416_p1 = pnand %p836_p13, %p835_p11 }
 0x340   : > { %p417_p2 = pneg %p416_p1 }
 0x342   : > { %582 = dma.done.wait (%p417_p2), %s316_s8, 128  }
 0x343   : > { %584 = vsyncadd (%p417_p2), %s316_s8, 4294967168  ;;  %p16_p0 = scmp.ge.s32.totalorder %s668_s20, 4   ;;  %s837_s9 = smov %s591_s10 }
 0x344   : > { %s838_s10 = smov %s595_s11  ;;  %s839_s11 = smov %s695_s28 }
 0x345   : > { %s840_s12 = smov %s668_s20  ;;  %18 = sbr.rel (!%p16_p0) target bundleno = 6 (0x6), region = 78 }
 0x34a   :  { %321 = vsyncpa [#allocation3], 1 }
 0x34b   :  { %323 = vsyncpa [#allocation3 + $0x1], 1 }
 0x34c   :  { %324 = vsyncpa [#allocation6], 1 }
 0x34d   :  { %326 = vsyncpa [#allocation6 + $0x1], 1 }
 0x34e   :  { %327 = vsyncpa [#allocation4], 1 }
 0x34f   :  { %329 = vsyncpa [#allocation4 + $0x1], 1 }

</bundles_post_ra>
